<compile_context>
chip_gen: v7x
topology: tpu7x:2x2x1
jax: 0.10.0
libtpu: 0.0.40
codegen_flags: <defaults>
</compile_context>

<pallas_src>
import functools
import math

import jax
import jax.numpy as jnp
from jax.experimental import pallas as pl
from jax.experimental.pallas import tpu as pltpu


# ------------------------------ helpers ------------------------------------ #

def _round_up(n, m):
    return ((n + m - 1) // m) * m


def _pad2d(a, shape):
    pads = [(0, s - d) for s, d in zip(shape, a.shape)]
    if all(p == (0, 0) for p in pads):
        return a
    return jnp.pad(a, pads)


# ------------------------------ kernels ------------------------------------ #

def _matmul_bias_f32(a, w_ref, b_ref):
    """(a @ W) accumulated in f32 on the MXU, + f32 bias."""
    acc = jnp.dot(a, w_ref[...], preferred_element_type=jnp.float32)
    return acc + b_ref[...].astype(jnp.float32)


def _dense_block_proj_kernel(x_ref, w1_ref, b1_ref, w2_ref, b2_ref,
                             ws_ref, bs_ref, o_ref, *, d_pad):
    """input_dim != output_dim: shortcut is a Linear projection.
       out[:, :D]  = relu(fc2(relu(fc1(x))))
       out[:, D:]  = relu(shortcut(x))
    """
    x = x_ref[...]
    h = jnp.maximum(_matmul_bias_f32(x, w1_ref, b1_ref), 0.0)
    y = _matmul_bias_f32(h.astype(w2_ref.dtype), w2_ref, b2_ref)
    r = _matmul_bias_f32(x, ws_ref, bs_ref)
    # Two lane-aligned slab stores instead of jnp.concatenate.
    o_ref[:, :d_pad] = jnp.maximum(y, 0.0).astype(o_ref.dtype)
    o_ref[:, d_pad:] = jnp.maximum(r, 0.0).astype(o_ref.dtype)


def _dense_block_identity_kernel(x_ref, w1_ref, b1_ref, w2_ref, b2_ref,
                                 o_ref, *, d_pad):
    """input_dim == output_dim: identity shortcut."""
    x = x_ref[...]
    h = jnp.maximum(_matmul_bias_f32(x, w1_ref, b1_ref), 0.0)
    y = _matmul_bias_f32(h.astype(w2_ref.dtype), w2_ref, b2_ref)
    o_ref[:, :d_pad] = jnp.maximum(y, 0.0).astype(o_ref.dtype)
    o_ref[:, d_pad:] = jnp.maximum(x.astype(jnp.float32), 0.0).astype(o_ref.dtype)


# ------------------------------ wrapper ------------------------------------ #

def dense_block(x, params, *, pad_to=128, batch_tile=128, compute_dtype=None):
    """Fused DenseBlock forward.

    x: (B, input_dim) f32.  params: dict from init_dense_block.
    compute_dtype: None (f32 matmuls) or jnp.bfloat16 (bf16 MXU inputs,
    f32 accumulation/bias/ReLU).  Returns (B, 2 * output_dim).
    """
    w1, b1 = params["fc1"]
    w2, b2 = params["fc2"]
    has_proj = "shortcut" in params

    B, din = x.shape
    dout = w1.shape[1]
    if not has_proj:
        assert din == dout, "identity shortcut requires input_dim == output_dim"

    # Pad feature dims to lane multiples (128); batch to sublane multiples
    # (16 when bf16 so packed sublanes aren't half-empty, else 8).
    din_p = _round_up(din, pad_to)
    d_p = _round_up(dout, pad_to)
    sub = 16 if compute_dtype == jnp.bfloat16 else 8
    b_p = _round_up(B, sub)
    bt = min(batch_tile, b_p)
    b_p = _round_up(b_p, bt)

    cd = compute_dtype
    xp = _pad2d(x, (b_p, din_p))
    w1p = _pad2d(w1, (din_p, d_p))
    w2p = _pad2d(w2, (d_p, d_p))
    if cd is not None:
        xp = xp.astype(cd)
        w1p = w1p.astype(cd)
        w2p = w2p.astype(cd)
    b1p = _pad2d(b1, (1, d_p))          # biases stay f32 (f32 accumulate)
    b2p = _pad2d(b2, (1, d_p))

    grid = (b_p // bt,)
    in_specs = [
        pl.BlockSpec((bt, din_p), lambda i: (i, 0)),     # x: tiled over batch
        pl.BlockSpec((din_p, d_p), lambda i: (0, 0)),    # w1: replicated
        pl.BlockSpec((1, d_p), lambda i: (0, 0)),        # b1
        pl.BlockSpec((d_p, d_p), lambda i: (0, 0)),      # w2
        pl.BlockSpec((1, d_p), lambda i: (0, 0)),        # b2
    ]
    args = [xp, w1p, b1p, w2p, b2p]
    flops = 2 * b_p * din_p * d_p + 2 * b_p * d_p * d_p

    if has_proj:
        ws, bs = params["shortcut"]
        wsp = _pad2d(ws, (din_p, d_p))
        if cd is not None:
            wsp = wsp.astype(cd)
        bsp = _pad2d(bs, (1, d_p))
        in_specs += [
            pl.BlockSpec((din_p, d_p), lambda i: (0, 0)),  # shortcut W
            pl.BlockSpec((1, d_p), lambda i: (0, 0)),      # shortcut b
        ]
        args += [wsp, bsp]
        flops += 2 * b_p * din_p * d_p
        kernel = functools.partial(_dense_block_proj_kernel, d_pad=d_p)
    else:
        kernel = functools.partial(_dense_block_identity_kernel, d_pad=d_p)

    out_dtype = jnp.float32
    bytes_accessed = sum(int(a.size) * a.dtype.itemsize for a in args)
    bytes_accessed += b_p * 2 * d_p * jnp.dtype(out_dtype).itemsize

    out_padded = pl.pallas_call(
        kernel,
        out_shape=jax.ShapeDtypeStruct((b_p, 2 * d_p), out_dtype),
        grid=grid,
        in_specs=in_specs,
        out_specs=pl.BlockSpec((bt, 2 * d_p), lambda i: (i, 0)),
        compiler_params=pltpu.CompilerParams(
            dimension_semantics=("parallel",)),
        cost_estimate=pl.CostEstimate(
            flops=flops, transcendentals=0, bytes_accessed=bytes_accessed),
    )(*args)

    # Un-pad: keep the real columns of each half and the real batch rows.
    out = jnp.concatenate(
        [out_padded[:B, :dout], out_padded[:B, d_p:d_p + dout]], axis=1)
    return out


# --------------------------- parameter init --------------------------------- #

def init_linear_params(key, din, dout):
    """PyTorch nn.Linear default init: U(-1/sqrt(din), 1/sqrt(din))."""
    kw, kb = jax.random.split(key)
    bound = 1.0 / math.sqrt(din)
    w = jax.random.uniform(kw, (din, dout), jnp.float32, -bound, bound)
    b = jax.random.uniform(kb, (1, dout), jnp.float32, -bound, bound)
    return w, b


def init_dense_block(key, input_dim, output_dim):
    k1, k2, k3 = jax.random.split(key, 3)
    params = {
        "fc1": init_linear_params(k1, input_dim, output_dim),
        "fc2": init_linear_params(k2, output_dim, output_dim),
    }
    if input_dim != output_dim:
        params["shortcut"] = init_linear_params(k3, input_dim, output_dim)
    return params


# ------------------------------ reference ----------------------------------- #

def dense_block_reference(x, params):
    """Pure-JAX f32 reference (same math as the torch module, no Pallas)."""
    w1, b1 = params["fc1"]
    w2, b2 = params["fc2"]
    if "shortcut" in params:
        ws, bs = params["shortcut"]
        residual = x @ ws + bs
    else:
        residual = x
    out = jnp.maximum(x @ w1 + b1, 0.0)
    out = out @ w2 + b2
    out = jnp.concatenate([out, residual], axis=1)
    return jnp.maximum(out, 0.0)


# -------------------------------- main -------------------------------------- #

if __name__ == "__main__":
    key = jax.random.PRNGKey(0)

    # Case 1: projection shortcut (input_dim != output_dim).
    batch, input_dim, output_dim = 8, 16, 32
    k1, k2, key = jax.random.split(key, 3)
    x = jax.random.normal(k1, (batch, input_dim), dtype=jnp.float32)
    params = init_dense_block(k2, input_dim, output_dim)

    out = jax.block_until_ready(dense_block(x, params))
    ref = dense_block_reference(x, params)
    assert out.shape == (batch, 2 * output_dim)
    assert jnp.allclose(out, ref, atol=1e-5, rtol=1e-5)

    # Case 2: identity shortcut (input_dim == output_dim).
    k1, k2, key = jax.random.split(key, 3)
    x2 = jax.random.normal(k1, (batch, 32), dtype=jnp.float32)
    params2 = init_dense_block(k2, 32, 32)
    out2 = jax.block_until_ready(dense_block(x2, params2))
    ref2 = dense_block_reference(x2, params2)
    assert out2.shape == (batch, 64)
    assert jnp.allclose(out2, ref2, atol=1e-5, rtol=1e-5)

    # Case 3: bf16 MXU path (f32 accumulation), looser tolerance.
    out3 = jax.block_until_ready(
        dense_block(x, params, compute_dtype=jnp.bfloat16))
    assert out3.shape == (batch, 2 * output_dim)
    assert jnp.allclose(out3, ref, atol=5e-2, rtol=5e-2)

    print("KERNEL_OK")
</pallas_src>

<mosaic_0001>
module attributes {stable_mosaic.version = 11 : i64} {
  func.func @_dense_block_proj_kernel(%arg0: i32, %arg1: memref<8x128xf32, #tpu.memory_space<vmem>>, %arg2: memref<128x128xf32, #tpu.memory_space<vmem>>, %arg3: memref<1x128xf32, #tpu.memory_space<vmem>>, %arg4: memref<128x128xf32, #tpu.memory_space<vmem>>, %arg5: memref<1x128xf32, #tpu.memory_space<vmem>>, %arg6: memref<128x128xf32, #tpu.memory_space<vmem>>, %arg7: memref<1x128xf32, #tpu.memory_space<vmem>>, %arg8: memref<8x256xf32, #tpu.memory_space<vmem>>) attributes {dimension_semantics = [#tpu.dimension_semantics<parallel>], iteration_bounds = array<i64: 1>, scalar_prefetch = 0 : i64, scratch_operands = 0 : i64, tpu.core_type = #tpu.core_type<tc>, window_params = [{transform_indices = @transform_0, window_bounds = array<i64: 8, 128>}, {pipeline_mode = #tpu.pipeline_mode<synchronous>, transform_indices = @transform_1, window_bounds = array<i64: 128, 128>}, {pipeline_mode = #tpu.pipeline_mode<synchronous>, transform_indices = @transform_2, window_bounds = array<i64: 1, 128>}, {pipeline_mode = #tpu.pipeline_mode<synchronous>, transform_indices = @transform_3, window_bounds = array<i64: 128, 128>}, {pipeline_mode = #tpu.pipeline_mode<synchronous>, transform_indices = @transform_4, window_bounds = array<i64: 1, 128>}, {pipeline_mode = #tpu.pipeline_mode<synchronous>, transform_indices = @transform_5, window_bounds = array<i64: 128, 128>}, {pipeline_mode = #tpu.pipeline_mode<synchronous>, transform_indices = @transform_6, window_bounds = array<i64: 1, 128>}, {transform_indices = @transform_7, window_bounds = array<i64: 8, 256>}]} {
    %c0 = arith.constant 0 : index
    %c0_0 = arith.constant 0 : index
    %0 = vector.load %arg1[%c0, %c0_0] : memref<8x128xf32, #tpu.memory_space<vmem>>, vector<8x128xf32>
    %c0_1 = arith.constant 0 : index
    %c0_2 = arith.constant 0 : index
    %1 = vector.load %arg2[%c0_1, %c0_2] : memref<128x128xf32, #tpu.memory_space<vmem>>, vector<128x128xf32>
    %cst = arith.constant dense<0.000000e+00> : vector<8x128xf32>
    %2 = tpu.matmul %0, %1, %cst {dimension_numbers = #tpu.dot_dimension_numbers<[1], [0], [0], [1], [0, 0, 1, 1], [], []>} : vector<8x128xf32>, vector<128x128xf32>, vector<8x128xf32> -> vector<8x128xf32>
    %c0_3 = arith.constant 0 : index
    %c0_4 = arith.constant 0 : index
    %3 = vector.load %arg3[%c0_3, %c0_4] : memref<1x128xf32, #tpu.memory_space<vmem>>, vector<1x128xf32>
    %4 = vector.broadcast %3 : vector<1x128xf32> to vector<8x128xf32>
    %5 = arith.addf %2, %4 : vector<8x128xf32>
    %cst_5 = arith.constant 0.000000e+00 : f32
    %6 = vector.broadcast %cst_5 : f32 to vector<8x128xf32>
    %7 = arith.maximumf %5, %6 : vector<8x128xf32>
    %c0_6 = arith.constant 0 : index
    %c0_7 = arith.constant 0 : index
    %8 = vector.load %arg4[%c0_6, %c0_7] : memref<128x128xf32, #tpu.memory_space<vmem>>, vector<128x128xf32>
    %cst_8 = arith.constant dense<0.000000e+00> : vector<8x128xf32>
    %9 = tpu.matmul %7, %8, %cst_8 {dimension_numbers = #tpu.dot_dimension_numbers<[1], [0], [0], [1], [0, 0, 1, 1], [], []>} : vector<8x128xf32>, vector<128x128xf32>, vector<8x128xf32> -> vector<8x128xf32>
    %c0_9 = arith.constant 0 : index
    %c0_10 = arith.constant 0 : index
    %10 = vector.load %arg5[%c0_9, %c0_10] : memref<1x128xf32, #tpu.memory_space<vmem>>, vector<1x128xf32>
    %11 = vector.broadcast %10 : vector<1x128xf32> to vector<8x128xf32>
    %12 = arith.addf %9, %11 : vector<8x128xf32>
    %c0_11 = arith.constant 0 : index
    %c0_12 = arith.constant 0 : index
    %13 = vector.load %arg6[%c0_11, %c0_12] : memref<128x128xf32, #tpu.memory_space<vmem>>, vector<128x128xf32>
    %cst_13 = arith.constant dense<0.000000e+00> : vector<8x128xf32>
    %14 = tpu.matmul %0, %13, %cst_13 {dimension_numbers = #tpu.dot_dimension_numbers<[1], [0], [0], [1], [0, 0, 1, 1], [], []>} : vector<8x128xf32>, vector<128x128xf32>, vector<8x128xf32> -> vector<8x128xf32>
    %c0_14 = arith.constant 0 : index
    %c0_15 = arith.constant 0 : index
    %15 = vector.load %arg7[%c0_14, %c0_15] : memref<1x128xf32, #tpu.memory_space<vmem>>, vector<1x128xf32>
    %16 = vector.broadcast %15 : vector<1x128xf32> to vector<8x128xf32>
    %17 = arith.addf %14, %16 : vector<8x128xf32>
    %cst_16 = arith.constant 0.000000e+00 : f32
    %18 = vector.broadcast %cst_16 : f32 to vector<8x128xf32>
    %19 = arith.maximumf %12, %18 : vector<8x128xf32>
    %c0_17 = arith.constant 0 : index
    %c0_18 = arith.constant 0 : index
    %20 = vector.load %arg8[%c0_17, %c0_18] : memref<8x256xf32, #tpu.memory_space<vmem>>, vector<8x128xf32>
    tpu.vector_store %arg8[%c0_17, %c0_18], %19 {strides = array<i32>} : memref<8x256xf32, #tpu.memory_space<vmem>>, vector<8x128xf32>,
    %cst_19 = arith.constant 0.000000e+00 : f32
    %21 = vector.broadcast %cst_19 : f32 to vector<8x128xf32>
    %22 = arith.maximumf %17, %21 : vector<8x128xf32>
    %c0_20 = arith.constant 0 : index
    %c128 = arith.constant 128 : index
    %23 = vector.load %arg8[%c0_20, %c128] : memref<8x256xf32, #tpu.memory_space<vmem>>, vector<8x128xf32>
    tpu.vector_store %arg8[%c0_20, %c128], %22 {strides = array<i32>} : memref<8x256xf32, #tpu.memory_space<vmem>>, vector<8x128xf32>,
    return
  }
  func.func @transform_0(%arg0: i32) -> (i32, i32) {
    %c0_i32 = arith.constant 0 : i32
    %c0_i32_0 = arith.constant 0 : i32
    return %arg0, %c0_i32 : i32, i32
  }
  func.func @transform_1(%arg0: i32) -> (i32, i32) {
    %c0_i32 = arith.constant 0 : i32
    %c0_i32_0 = arith.constant 0 : i32
    %c0_i32_1 = arith.constant 0 : i32
    return %c0_i32, %c0_i32_0 : i32, i32
  }
  func.func @transform_2(%arg0: i32) -> (i32, i32) {
    %c0_i32 = arith.constant 0 : i32
    %c0_i32_0 = arith.constant 0 : i32
    %c0_i32_1 = arith.constant 0 : i32
    return %c0_i32, %c0_i32_0 : i32, i32
  }
  func.func @transform_3(%arg0: i32) -> (i32, i32) {
    %c0_i32 = arith.constant 0 : i32
    %c0_i32_0 = arith.constant 0 : i32
    %c0_i32_1 = arith.constant 0 : i32
    return %c0_i32, %c0_i32_0 : i32, i32
  }
  func.func @transform_4(%arg0: i32) -> (i32, i32) {
    %c0_i32 = arith.constant 0 : i32
    %c0_i32_0 = arith.constant 0 : i32
    %c0_i32_1 = arith.constant 0 : i32
    return %c0_i32, %c0_i32_0 : i32, i32
  }
  func.func @transform_5(%arg0: i32) -> (i32, i32) {
    %c0_i32 = arith.constant 0 : i32
    %c0_i32_0 = arith.constant 0 : i32
    %c0_i32_1 = arith.constant 0 : i32
    return %c0_i32, %c0_i32_0 : i32, i32
  }
  func.func @transform_6(%arg0: i32) -> (i32, i32) {
    %c0_i32 = arith.constant 0 : i32
    %c0_i32_0 = arith.constant 0 : i32
    %c0_i32_1 = arith.constant 0 : i32
    return %c0_i32, %c0_i32_0 : i32, i32
  }
  func.func @transform_7(%arg0: i32) -> (i32, i32) {
    %c0_i32 = arith.constant 0 : i32
    %c0_i32_0 = arith.constant 0 : i32
    return %arg0, %c0_i32 : i32, i32
  }
}

</mosaic_0001>

<bundles_post_ra>
// kernel: tpu_custom_call.1
= control target key start
LH: loop header
LB: loop body
LE: loop exit
PB: predicated region body
PF: predicated region fallthrough
CT: control target
= control target key end

     0   :  { %12 = vsyncpa [#allocation3], 0  ;;  %s899_s0 = inlined_call_operand.hbm [shape: f32[8,128], index: 0, kind: input, shape index: {}]   ;;  %s900_s1 = inlined_call_operand.hbm [shape: f32[128,128], index: 1, kind: input, shape index: {}]   ;;  %s901_s2 = inlined_call_operand.vmem [shape: f32[1,128], index: 2, kind: input, shape index: {}]   ;;  %s902_s3 = inlined_call_operand.hbm [shape: f32[128,128], index: 3, kind: input, shape index: {}]   ;;  %s903_s4 = inlined_call_operand.vmem [shape: f32[1,128], index: 4, kind: input, shape index: {}]   ;;  %s904_s5 = inlined_call_operand.hbm [shape: f32[128,128], index: 5, kind: input, shape index: {}]   ;;  %s905_s6 = inlined_call_operand.vmem [shape: f32[1,128], index: 6, kind: input, shape index: {}]   ;;  %s906_s7 = inlined_call_operand.hbm [shape: f32[8,256], index: 7, kind: output, shape index: {}]  }
   0x1   :  { %13 = vsyncpa [#allocation6], 0 }
   0x2   :  { %14 = vsyncpa [#allocation9], 0 }
   0x3   :  { %15 = vsyncpa [#allocation4], 0  ;;  %s741_s24 = smov [#allocation5]   ;;  %s623_s28 = scalar_lea.hbm %s900_s1, 2048 }
   0x4   :  { %s31_s25 = sshll.u32 %s741_s24, 4  ;;  %p624_p0 = scmp.ne.s32.totalorder %s900_s1, %s623_s28  ;;  %s32_s25 = int_to_ptr.vmem [resolvable:$true] %s31_s25 }
   0x5   :  { %p627_p1 = scmp.lt.u32.totalorder %s623_s28, %s900_s1 }
   0x7   :  { %p629_p2 = pnand %p627_p1, %p624_p0 }
   0x9   :  { %632 = shalt.err (!%p629_p2)
}
   0xa   :  { %s633_s10 = scalar_lea.vmem %s32_s25, 2048  ;;  %p638_p4 = scmp.lt.s32.totalorder %s32_s25, %s32_s25 }
   0xb   :  { %p634_p3 = scmp.ne.s32.totalorder %s32_s25, %s633_s10  ;;  %p639_p5 = scmp.lt.s32.totalorder %s633_s10, %s633_s10 }
   0xd   :  { %p640_p6 = por %p639_p5, %p638_p4 }
   0xf   :  { %p641_p7 = pnand %p640_p6, %p634_p3 }
  0x11   :  { %644 = shalt.err (!%p641_p7)
}
  0x12   :  { %s742_s11 = smov 128   ;;  %s743_s12 = smov 8  }
  0x13   :  { %37 = dma.hbm_to_vmem [thread:$0]  %s900_s1, 2048, %s32_s25, [#allocation6], %s742_s11, %s742_s11, %s743_s12  }
  0x14   :  { %s744_s15 = smov [#allocation2]   ;;  %s745_s17 = smov [#allocation7]  }
  0x15   :  { %s22_s16 = sshll.u32 %s744_s15, 4  ;;  %s45_s18 = sshll.u32 %s745_s17, 4  ;;  %s23_s16 = int_to_ptr.vmem [resolvable:$true] %s22_s16  ;;  %s46_s18 = int_to_ptr.vmem [resolvable:$true] %s45_s18 }
  0x16   :  { %s645_s21 = scalar_lea.hbm %s899_s0, 128 }
  0x17   :  { %p646_p8 = scmp.ne.s32.totalorder %s899_s0, %s645_s21  ;;  %p649_p9 = scmp.lt.u32.totalorder %s645_s21, %s899_s0 }
  0x19   :  { %p651_p10 = pnand %p649_p9, %p646_p8 }
  0x1b   :  { %654 = shalt.err (!%p651_p10)
}
  0x1c   :  { %s655_s1 = scalar_lea.vmem %s23_s16, 128  ;;  %p660_p12 = scmp.lt.s32.totalorder %s23_s16, %s23_s16 }
  0x1d   :  { %p656_p11 = scmp.ne.s32.totalorder %s23_s16, %s655_s1  ;;  %p661_p13 = scmp.lt.s32.totalorder %s655_s1, %s655_s1 }
  0x1f   :  { %p662_p0 = por %p661_p13, %p660_p12 }
  0x21   :  { %p663_p1 = pnand %p662_p0, %p656_p11 }
  0x23   :  { %666 = shalt.err (!%p663_p1)
}
  0x24   :  { %25 = dma.hbm_to_vmem [thread:$0]  %s899_s0, 128, %s23_s16, [#allocation3]  }
  0x25   :  { %s667_s30 = scalar_lea.hbm %s902_s3, 2048 }
  0x26   :  { %p668_p2 = scmp.ne.s32.totalorder %s902_s3, %s667_s30  ;;  %p671_p3 = scmp.lt.u32.totalorder %s667_s30, %s902_s3 }
  0x28   :  { %p673_p4 = pnand %p671_p3, %p668_p2 }
  0x2a   :  { %676 = shalt.err (!%p673_p4)
}
  0x2b   :  { %s677_s14 = scalar_lea.vmem %s46_s18, 2048  ;;  %p682_p6 = scmp.lt.s32.totalorder %s46_s18, %s46_s18 }
  0x2c   :  { %p678_p5 = scmp.ne.s32.totalorder %s46_s18, %s677_s14  ;;  %p683_p7 = scmp.lt.s32.totalorder %s677_s14, %s677_s14 }
  0x2e   :  { %p684_p8 = por %p683_p7, %p682_p6 }
  0x30   :  { %p685_p9 = pnand %p684_p8, %p678_p5 }
  0x32   :  { %688 = shalt.err (!%p685_p9)
}
  0x33   :  { %51 = dma.hbm_to_vmem [thread:$0]  %s902_s3, 2048, %s46_s18, [#allocation6], %s742_s11, %s742_s11, %s743_s12  }
  0x34   :  { %s746_s16 = smov [#allocation8]   ;;  %s689_s21 = scalar_lea.hbm %s904_s5, 2048 }
  0x35   :  { %s59_s17 = sshll.u32 %s746_s16, 4  ;;  %p690_p10 = scmp.ne.s32.totalorder %s904_s5, %s689_s21  ;;  %s60_s17 = int_to_ptr.vmem [resolvable:$true] %s59_s17 }
  0x36   :  { %p693_p11 = scmp.lt.u32.totalorder %s689_s21, %s904_s5 }
  0x38   :  { %p695_p12 = pnand %p693_p11, %p690_p10 }
  0x3a   :  { %698 = shalt.err (!%p695_p12)
}
  0x3b   :  { %s699_s1 = scalar_lea.vmem %s60_s17, 2048  ;;  %p704_p0 = scmp.lt.s32.totalorder %s60_s17, %s60_s17 }
  0x3c   :  { %p700_p13 = scmp.ne.s32.totalorder %s60_s17, %s699_s1  ;;  %p705_p1 = scmp.lt.s32.totalorder %s699_s1, %s699_s1 }
  0x3e   :  { %p706_p2 = por %p705_p1, %p704_p0 }
  0x40   :  { %p707_p3 = pnand %p706_p2, %p700_p13 }
  0x42   :  { %710 = shalt.err (!%p707_p3)
}
  0x43   :  { %65 = dma.hbm_to_vmem [thread:$0]  %s904_s5, 2048, %s60_s17, [#allocation9], %s742_s11, %s742_s11, %s743_s12  }
  0x44   :  { %733 = dma.done.wait [#allocation3], 128  }
  0x45   :  { %734 = vsyncadd [#allocation3], 4294967168 }
  0x46   :  { %735 = dma.done.wait [#allocation6], 4096  }
  0x47   :  { %736 = vsyncadd [#allocation6], 4294963200 }
  0x48   :  { %737 = dma.done.wait [#allocation9], 2048  }
  0x49   :  { %738 = vsyncadd [#allocation9], 4294965248  ;;  %v747_v0 = vmov 0.0|0.0   ;;  %vm748_vm0 = vmmov 0   ;;  %v749_v1 = vmov 0.0   ;;  %v81_v2 = vld [vmem:[#allocation5] sm:$0xff] }
  0x4a   :  { %541 = vmatprep.subr.bf16.mxu0 %v747_v0  ;;  %468 = vmatprep.mubr.msk.f32.mxu0 %vm748_vm0, %v749_v1  ;;  %v82_v3 = vld [vmem:[#allocation5 + $0x8] sm:$0xff]  ;;  %v83_v4 = vld [vmem:[#allocation5 + $0x10] sm:$0xff]  ;;  %v84_v6 = vld [vmem:[#allocation5 + $0x18] sm:$0xff] }
  0x4b   :  { %565 = vmatprep.subr.bf16.mxu1 %v747_v0  ;;  %503 = vmatprep.mubr.msk.f32.mxu1 %vm748_vm0, %v749_v1  ;;  %v542_v5 = vpack.c.bf16 %v82_v3, %v81_v2  ;;  %v545_v7 = vpack.c.bf16 %v84_v6, %v83_v4  ;;  %v85_v8 = vld [vmem:[#allocation5 + $0x20] sm:$0xff]  ;;  %v86_v9 = vld [vmem:[#allocation5 + $0x28] sm:$0xff]  ;;  %v177_v14 = vld [vmem:[#allocation7 + $0x10] sm:$0xff] }
  0x4c   :  { %v175_v10 = vld [vmem:[#allocation7] sm:$0xff]  ;;  %v176_v11 = vld [vmem:[#allocation7 + $0x8] sm:$0xff]  ;;  %v548_v12 = vpack.c.bf16 %v86_v9, %v85_v8  ;;  %v87_v15 = vld [vmem:[#allocation5 + $0x30] sm:$0xff] }
  0x4d   :  { %543 = vmatpush3.bf16.msra.mxu0 %v542_v5  ;;  %v566_v13 = vpack.c.bf16 %v176_v11, %v175_v10  ;;  %v88_v16 = vld [vmem:[#allocation5 + $0x38] sm:$0xff]  ;;  %v179_v19 = vld [vmem:[#allocation7 + $0x20] sm:$0xff]  ;;  %v180_v20 = vld [vmem:[#allocation7 + $0x28] sm:$0xff] }
  0x4e   :  { %544 = vmatprep.subr.bf16.mxu0 %v747_v0  ;;  %v178_v17 = vld [vmem:[#allocation7 + $0x18] sm:$0xff]  ;;  %v551_v21 = vpack.c.bf16 %v88_v16, %v87_v15  ;;  %v89_v22 = vld [vmem:[#allocation5 + $0x40] sm:$0xff]  ;;  %v90_v23 = vld [vmem:[#allocation5 + $0x48] sm:$0xff]  ;;  %v572_v24 = vpack.c.bf16 %v180_v20, %v179_v19 }
  0x4f   :  { %567 = vmatpush3.bf16.msra.mxu1 %v566_v13  ;;  %v569_v18 = vpack.c.bf16 %v178_v17, %v177_v14  ;;  %v181_v25 = vld [vmem:[#allocation7 + $0x30] sm:$0xff]  ;;  %v182_v26 = vld [vmem:[#allocation7 + $0x38] sm:$0xff]  ;;  %v554_v27 = vpack.c.bf16 %v90_v23, %v89_v22  ;;  %v183_v31 = vld [vmem:[#allocation7 + $0x40] sm:$0xff] }
  0x50   :  { %568 = vmatprep.subr.bf16.mxu1 %v747_v0  ;;  %v91_v28 = vld [vmem:[#allocation5 + $0x50] sm:$0xff]  ;;  %v92_v29 = vld [vmem:[#allocation5 + $0x58] sm:$0xff]  ;;  %v575_v30 = vpack.c.bf16 %v182_v26, %v181_v25  ;;  %v184_v32 = vld [vmem:[#allocation7 + $0x48] sm:$0xff] }
  0x51   :  { %546 = vmatpush3.bf16.msra.mxu0 %v545_v7  ;;  %v557_v33 = vpack.c.bf16 %v92_v29, %v91_v28  ;;  %v93_v34 = vld [vmem:[#allocation5 + $0x60] sm:$0xff]  ;;  %v94_v35 = vld [vmem:[#allocation5 + $0x68] sm:$0xff]  ;;  %v578_v36 = vpack.c.bf16 %v184_v32, %v183_v31  ;;  %v185_v37 = vld [vmem:[#allocation7 + $0x50] sm:$0xff] }
  0x52   :  { %547 = vmatprep.subr.bf16.mxu0 %v747_v0  ;;  %v186_v38 = vld [vmem:[#allocation7 + $0x58] sm:$0xff]  ;;  %v560_v39 = vpack.c.bf16 %v94_v35, %v93_v34  ;;  %v95_v40 = vld [vmem:[#allocation5 + $0x70] sm:$0xff]  ;;  %v187_v43 = vld [vmem:[#allocation7 + $0x60] sm:$0xff] }
  0x53   :  { %570 = vmatpush3.bf16.msra.mxu1 %v569_v18  ;;  %v96_v41 = vld [vmem:[#allocation5 + $0x78] sm:$0xff]  ;;  %v581_v42 = vpack.c.bf16 %v186_v38, %v185_v37  ;;  %v188_v44 = vld [vmem:[#allocation7 + $0x68] sm:$0xff]  ;;  %v268_v46 = vld [vmem:[#allocation8] sm:$0xff] }
  0x54   :  { %571 = vmatprep.subr.bf16.mxu1 %v747_v0  ;;  %v563_v45 = vpack.c.bf16 %v96_v41, %v95_v40  ;;  %v269_v47 = vld [vmem:[#allocation8 + $0x8] sm:$0xff]  ;;  %v584_v48 = vpack.c.bf16 %v188_v44, %v187_v43  ;;  %v80_v49 = vld [vmem:[#allocation2] sm:$0xff]  ;;  %v270_v51 = vld [vmem:[#allocation8 + $0x10] sm:$0xff] }
  0x55   :  { %549 = vmatpush3.bf16.msra.mxu0 %v548_v12  ;;  %v590_v50 = vpack.c.bf16 %v269_v47, %v268_v46  ;;  %v271_v52 = vld [vmem:[#allocation8 + $0x18] sm:$0xff]  ;;  %v272_v54 = vld [vmem:[#allocation8 + $0x20] sm:$0xff]  ;;  %v273_v55 = vld [vmem:[#allocation8 + $0x28] sm:$0xff] }
  0x56   :  { %550 = vmatprep.subr.bf16.mxu0 %v747_v0  ;;  %v593_v53 = vpack.c.bf16 %v271_v52, %v270_v51  ;;  %v596_v56 = vpack.c.bf16 %v273_v55, %v272_v54  ;;  %v274_v57 = vld [vmem:[#allocation8 + $0x30] sm:$0xff]  ;;  %v275_v58 = vld [vmem:[#allocation8 + $0x38] sm:$0xff]  ;;  %v276_v60 = vld [vmem:[#allocation8 + $0x40] sm:$0xff] }
  0x57   :  { %573 = vmatpush3.bf16.msra.mxu1 %v572_v24  ;;  %v599_v59 = vpack.c.bf16 %v275_v58, %v274_v57  ;;  %v277_v61 = vld [vmem:[#allocation8 + $0x48] sm:$0xff]  ;;  %v278_v63 = vld [vmem:[#allocation8 + $0x50] sm:$0xff]  ;;  %v280_v3 = vld [vmem:[#allocation8 + $0x60] sm:$0xff] }
  0x58   :  { %574 = vmatprep.subr.bf16.mxu1 %v747_v0  ;;  %v602_v62 = vpack.c.bf16 %v277_v61, %v276_v60  ;;  %v281_v4 = vld [vmem:[#allocation8 + $0x68] sm:$0xff]  ;;  %v282_v6 = vld [vmem:[#allocation8 + $0x70] sm:$0xff]  ;;  %v283_v7 = vld [vmem:[#allocation8 + $0x78] sm:$0xff] }
  0x59   :  { %552 = vmatpush3.bf16.msra.mxu0 %v551_v21  ;;  %v608_v5 = vpack.c.bf16 %v281_v4, %v280_v3  ;;  %v611_v8 = vpack.c.bf16 %v283_v7, %v282_v6  ;;  %v189_v9 = vld [vmem:[#allocation7 + $0x70] sm:$0xff]  ;;  %v190_v10 = vld [vmem:[#allocation7 + $0x78] sm:$0xff] }
  0x5a   :  { %553 = vmatprep.subr.bf16.mxu0 %v747_v0  ;;  %v587_v11 = vpack.c.bf16 %v190_v10, %v189_v9  ;;  %v382_v12 = vld [vmem:[%s901_s2] ss:$0 sm:$0xff]  ;;  %s750_s2 = smov [#allocation10]  }
  0x5b   :  { %576 = vmatpush3.bf16.msra.mxu1 %v575_v30  ;;  %v383_v21 = vld [vmem:[%s903_s4] ss:$0 sm:$0xff]  ;;  %s371_s29 = sshll.u32 %s750_s2, 4  ;;  %s372_s29 = int_to_ptr.vmem [resolvable:$true] %s371_s29 }
  0x5c   :  { %577 = vmatprep.subr.bf16.mxu1 %v747_v0  ;;  %s711_s30 = scalar_lea.vmem %s372_s29, 256  ;;  %p716_p5 = scmp.lt.s32.totalorder %s372_s29, %s372_s29 }
  0x5d   :  { %555 = vmatpush3.bf16.msra.mxu0 %v554_v27  ;;  %p712_p4 = scmp.ne.s32.totalorder %s372_s29, %s711_s30  ;;  %p717_p6 = scmp.lt.s32.totalorder %s711_s30, %s711_s30 }
  0x5e   :  { %556 = vmatprep.subr.bf16.mxu0 %v747_v0 }
  0x5f   :  { %579 = vmatpush3.bf16.msra.mxu1 %v578_v36  ;;  %p718_p7 = por %p717_p6, %p716_p5 }
  0x60   :  { %580 = vmatprep.subr.bf16.mxu1 %v747_v0 }
  0x61   :  { %558 = vmatpush3.bf16.msra.mxu0 %v557_v33  ;;  %p719_p8 = pnand %p718_p7, %p712_p4 }
  0x62   :  { %559 = vmatprep.subr.bf16.mxu0 %v747_v0 }
  0x63   :  { %582 = vmatpush3.bf16.msra.mxu1 %v581_v42 }
  0x64   :  { %583 = vmatprep.subr.bf16.mxu1 %v747_v0 }
  0x65   :  { %561 = vmatpush3.bf16.msra.mxu0 %v560_v39 }
  0x66   :  { %562 = vmatprep.subr.bf16.mxu0 %v747_v0 }
  0x67   :  { %585 = vmatpush3.bf16.msra.mxu1 %v584_v48 }
  0x68   :  { %586 = vmatprep.subr.bf16.mxu1 %v747_v0 }
  0x69   :  { %564 = vmatpush3.bf16.msra.mxu0 %v563_v45 }
  0x6a   :  { %589 = vmatprep.subr.bf16.mxu0 %v747_v0 }
  0x6b   :  { %588 = vmatpush3.bf16.msra.mxu1 %v587_v11 }
  0x6c   :  { %469 = vmatmul.mubr.f32.vlgmr.msra.gmra.mrb[0].mxu0 %v80_v49 }
  0x6d   :  { %591 = vmatpush3.bf16.msra.mxu0 %v590_v50  ;;  %538 = vmatprep.mubr.msk.f32.mxu0 %vm748_vm0, %v749_v1  ;;  %v279_v1 = vld [vmem:[#allocation8 + $0x58] sm:$0xff] }
  0x6e   :  { %592 = vmatprep.subr.bf16.mxu0 %v747_v0  ;;  %v605_v2 = vpack.c.bf16 %v279_v1, %v278_v63 }
  0x71   :  { %594 = vmatpush3.bf16.msra.mxu0 %v593_v53 }
  0x72   :  { %595 = vmatprep.subr.bf16.mxu0 %v747_v0 }
  0x75   :  { %597 = vmatpush3.bf16.msra.mxu0 %v596_v56 }
  0x76   :  { %598 = vmatprep.subr.bf16.mxu0 %v747_v0 }
  0x79   :  { %600 = vmatpush3.bf16.msra.mxu0 %v599_v59 }
  0x7a   :  { %601 = vmatprep.subr.bf16.mxu0 %v747_v0 }
  0x7d   :  { %603 = vmatpush3.bf16.msra.mxu0 %v602_v62 }
  0x7e   :  { %604 = vmatprep.subr.bf16.mxu0 %v747_v0 }
  0x81   :  { %606 = vmatpush3.bf16.msra.mxu0 %v605_v2 }
  0x82   :  { %607 = vmatprep.subr.bf16.mxu0 %v747_v0 }
  0x85   :  { %609 = vmatpush3.bf16.msra.mxu0 %v608_v5 }
  0x86   :  { %610 = vmatprep.subr.bf16.mxu0 %v747_v0  ;;  %v384_v0 = vld [vmem:[%s905_s6] ss:$0 sm:$0xff] }
  0x89   :  { %612 = vmatpush3.bf16.msra.mxu0 %v611_v8 }
  0x8c   :  { %539 = vmatmul.mubr.f32.vlgmr.msra.gmra.mrb[2].mxu0 %v80_v49 }
 0x13f   :  { %v170_v13 = vpop.f32.mrb[0].mxu0 }
 0x140   :  { %v171_v14 = vadd.f32 %v382_v12, %v170_v13  ;;  %v470_v15 = vpop.f32.mrb[1].mxu0 }
 0x142   :  { %v174_v16 = vmax.f32 %v171_v14, 0.0 }
 0x144   :  { %504 = vmatmul.mubr.f32.vlgmr.msra.gmra.mrb[0].mxu1 %v174_v16 }
 0x15f   :  { %v357_v17 = vpop.f32.mrb[2].mxu0 }
 0x160   :  { %v358_v18 = vadd.f32 %v384_v0, %v357_v17  ;;  %v540_v19 = vpop.f32.mrb[3].mxu0 }
 0x162   :  { %v363_v20 = vmax.f32 %v358_v18, 0.0 }
 0x164   :  { %364 = vst [vmem:[#allocation10 + $0x8] sm:$0xff] %v363_v20 }
 0x217   :  { %v264_v22 = vpop.f32.mrb[0].mxu1 }
 0x218   :  { %v265_v23 = vadd.f32 %v383_v21, %v264_v22  ;;  %v505_v24 = vpop.f32.mrb[1].mxu1 }
 0x21a   :  { %v361_v25 = vmax.f32 %v265_v23, 0.0 }
 0x21c   :  { %362 = vst [vmem:[#allocation10] sm:$0xff] %v361_v25 }
 0x21d   :  { %722 = shalt.err (!%p719_p8)
}
 0x21e   :  { %s723_s9 = scalar_lea.hbm %s906_s7, 256 }
 0x21f   :  { %p724_p9 = scmp.ne.s32.totalorder %s906_s7, %s723_s9  ;;  %p727_p10 = scmp.lt.u32.totalorder %s723_s9, %s906_s7 }
 0x221   :  { %p729_p11 = pnand %p727_p10, %p724_p9 }
 0x223   :  { %732 = shalt.err (!%p729_p11)
}
 0x224   :  { %374 = dma.vmem_to_hbm [thread:$0]  %s372_s29, 256, %s906_s7, [#allocation4]  }
 0x225   :  { %739 = dma.done.wait [#allocation4], 256  }
 0x226   :  { %740 = vsyncadd [#allocation4], 4294967040 }
 0x227   :  { %378 = vsyncpa [#allocation3], 1 }
 0x228   :  { %379 = vsyncpa [#allocation6], 1 }
 0x229   :  { %380 = vsyncpa [#allocation9], 1 }
 0x22a   :  { %381 = vsyncpa [#allocation4], 1 }

</bundles_post_ra>
